<compile_context>
chip_gen: v5e
topology: v5e:2x2
jax: 0.10.0
libtpu: 0.0.40
codegen_flags: <defaults>
</compile_context>

<pallas_src>
import functools

import numpy as np
import jax
import jax.numpy as jnp
from jax.experimental import pallas as pl
from jax.experimental.pallas import tpu as pltpu


def _pair_indices(num_fields):
    row, col = [], []
    for i in range(num_fields - 1):
        for j in range(i + 1, num_fields):
            row.append(i)
            col.append(j)
    return row, col


def _dcap_kernel(x_rows_ref, x_t_ref, qg_ref, wqs_ref, wkv_ref, mask_ref,
                 bdrow_ref, kern_ref, pool_ref, out_ref, res_ref,
                 *, num_heads, head_dim, emb):
    x_rows = x_rows_ref[...]      # (TB*F, E)   (batch,field)-major rows
    x_t = x_t_ref[...]            # (E, TB*F)   feature-major, lane-dense
    mask = mask_ref[...]          # (TB*F, TB*F) pre-scaled block-diag mask

    # Fused K and V projections for all heads: one MXU matmul per tile.
    #   rows [h*d, (h+1)*d)          -> head h of K (transposed layout)
    #   rows [E + h*d, E + (h+1)*d)  -> head h of V (transposed layout)
    kv_t = jnp.dot(wkv_ref[...], x_t, preferred_element_type=jnp.float32)

    for h in range(num_heads):          # static unroll; heads via sublane offsets
        lo = h * head_dim
        k_t = kv_t[lo:lo + head_dim, :]                    # (d, TBF)
        v_t = kv_t[emb + lo:emb + lo + head_dim, :]        # (d, TBF)

        # Q projection folded into the score matmul (associativity):
        #   s = (x @ Wq_h_scaled) @ k_t == x @ (Wq_h_scaled @ k_t)
        w_h = jnp.dot(wqs_ref[h], k_t, preferred_element_type=jnp.float32)   # (E, TBF)
        s = jnp.dot(x_rows, w_h, preferred_element_type=jnp.float32) + mask  # (TBF, TBF)

        # softmax over the query index j (rows) == torch softmax(dim=-1);
        # normalization is deferred past the V matmul and the ReLU (inv > 0).
        m = jnp.max(s, axis=0, keepdims=True)
        e = jnp.exp(s - m)
        inv = 1.0 / jnp.sum(e, axis=0, keepdims=True)      # (1, TBF), exact recip

        res_ref[lo:lo + head_dim, :] = (
            jnp.maximum(jnp.dot(v_t, e, preferred_element_type=jnp.float32), 0.0)
            * inv)                                          # (d, TBF)

    # Hoisted tail: one gather matmul, one elementwise kpq, one pool matmul.
    res_all = res_ref[...]                                               # (E, TBF)
    p_all = jnp.dot(res_all, bdrow_ref[...],
                    preferred_element_type=jnp.float32)                  # (E, TBP)
    kpq = p_all * kern_ref[...] * qg_ref[...]                            # (E, TBP)
    out_ref[...] = jnp.dot(pool_ref[...], kpq,
                           preferred_element_type=jnp.float32)           # (F+1, TBP)


@functools.partial(jax.jit, static_argnames=(
    "num_fields", "embedding_size", "num_heads", "max_batch_tile"))
def cross_attention_net(inputs, inputs_0, atten_mask, wq, wk, wv, kernel_param,
                        *, num_fields, embedding_size, num_heads,
                        max_batch_tile=32):
    B, F_, E = inputs.shape
    assert F_ == num_fields and E == embedding_size
    assert E % num_heads == 0
    H = num_heads
    d = E // H
    P = F_ * (F_ - 1) // 2
    Fp1 = F_ + 1
    scale = 1.0 / (d ** 0.5)

    # Batch tile: whole batch if small, else 32 rows per grid step.  TB=32
    # keeps TB*F and TB*P multiples of 128 (lane-dense blocks + unmasked
    # stores); with B <= 32 a single full-extent block is used instead.
    # For B > 32 the grid has >= 2 "parallel" tiles, which v7x shards across
    # its two TensorCores; a single small tile can't be split further without
    # breaking the 128-lane divisibility of TB*P.
    TB = B if B <= max_batch_tile else max_batch_tile
    B_pad = ((B + TB - 1) // TB) * TB
    nT = B_pad // TB
    TBF = TB * F_
    TBP = TB * P

    if B_pad != B:
        pad = ((0, B_pad - B), (0, 0), (0, 0))
        inputs = jnp.pad(inputs, pad)
        inputs_0 = jnp.pad(inputs_0, pad)

    row_idx, col_idx = _pair_indices(F_)
    row_np = np.asarray(row_idx)
    col_np = np.asarray(col_idx)

    # ---- static constants (numpy, baked in at trace time) ----------------
    # Row-gather one-hots (F, P), block-diagonal over the batch tile.
    srow_t = np.zeros((F_, P), np.float32)
    srow_t[row_np, np.arange(P)] = 1.0
    bd_row = np.kron(np.eye(TB, dtype=np.float32), srow_t)          # (TBF, TBP)

    # AdaptiveAvgPool1d(F) matrix with an extra all-ones column (= row-sum),
    # transposed so the kernel's final matmul is (F+1, E) @ (E, TBP).
    pool_ext = np.zeros((E, Fp1), np.float32)
    for t in range(F_):
        s0 = (t * E) // F_
        e0 = -(-((t + 1) * E) // F_)
        pool_ext[s0:e0, t] = 1.0 / (e0 - s0)
    pool_ext[:, F_] = 1.0
    pool_t = pool_ext.T                                              # (Fp1, E)

    off_block = (1.0 - np.kron(np.eye(TB, dtype=np.float32),
                               np.ones((F_, F_), np.float32))) * (-1e9)

    # ---- traced layout plumbing (wrapper side, fused under jit) ----------
    x_rows = inputs.reshape(B_pad * F_, E)                           # (B*F, E)
    x_t = jnp.transpose(inputs, (2, 0, 1)).reshape(E, B_pad * F_)    # (E, B*F)
    x0g = inputs_0[:, col_np, :]                                     # (B, P, E)
    qg = jnp.transpose(x0g, (2, 0, 1)).reshape(E, B_pad * P)         # (E, B*P)
    # 1/sqrt(d) folded into the Q weights and the additive mask.
    wq_heads = (wq * scale).reshape(E, H, d).transpose(1, 0, 2)      # (H, E, d)
    w_kv = jnp.concatenate([wk.T, wv.T], axis=0)                     # (2E, E)
    big_mask = (jnp.kron(jnp.eye(TB, dtype=jnp.float32), atten_mask.T)
                + jnp.asarray(off_block)) * scale                    # (TBF, TBF)
    kern = jnp.tile(kernel_param.T, (1, TB))                         # (E, TBP)

    kfn = functools.partial(_dcap_kernel, num_heads=H, head_dim=d, emb=E)

    out = pl.pallas_call(
        kfn,
        out_shape=jax.ShapeDtypeStruct((Fp1, B_pad * P), jnp.float32),
        grid=(nT,),
        in_specs=[
            pl.BlockSpec((TBF, E), lambda b: (b, 0)),          # x_rows
            pl.BlockSpec((E, TBF), lambda b: (0, b)),          # x_t
            pl.BlockSpec((E, TBP), lambda b: (0, b)),          # gathered inputs_0
            pl.BlockSpec((H, E, d), lambda b: (0, 0, 0)),      # scaled Q weight / head
            pl.BlockSpec((2 * E, E), lambda b: (0, 0)),        # fused K/V weight
            pl.BlockSpec((TBF, TBF), lambda b: (0, 0)),        # scaled block-diag mask
            pl.BlockSpec((TBF, TBP), lambda b: (0, 0)),        # row-gather one-hots
            pl.BlockSpec((E, TBP), lambda b: (0, 0)),          # DCAP kernel param
            pl.BlockSpec((Fp1, E), lambda b: (0, 0)),          # pool (+sum) matrix
        ],
        out_specs=pl.BlockSpec((Fp1, TBP), lambda b: (0, b)),
        scratch_shapes=[pltpu.VMEM((E, TBF), jnp.float32)],    # per-tile res_all
        compiler_params=pltpu.CompilerParams(
            dimension_semantics=("parallel",)),
    )(x_rows, x_t, qg, wq_heads, w_kv, big_mask,
      jnp.asarray(bd_row), kern, jnp.asarray(pool_t))

    out = out.reshape(Fp1, B_pad, P).transpose(1, 2, 0)[:B]          # (B, P, F+1)
    return out[..., :F_], out[..., F_]


def reference(inputs, inputs_0, atten_mask, wq, wk, wv, kernel_param,
              *, num_fields, num_heads):
    # Pure-JAX transcription of the PyTorch forward (for validation).
    E = inputs.shape[-1]
    d = E // num_heads
    q = jnp.einsum('bfe,eg->bfg', inputs, wq)
    k = jnp.einsum('bfe,eg->bfg', inputs, wk)
    v = jnp.einsum('bfe,eg->bfg', inputs, wv)
    split = lambda t: jnp.stack(jnp.split(t, num_heads, axis=2))   # (H,B,F,d)
    qh, kh, vh = split(q), split(k), split(v)
    ip = jnp.einsum('hbjk,hbik->hbij', qh, kh)
    ip = (ip + atten_mask) / (d ** 0.5)
    att = jax.nn.softmax(ip, axis=-1)
    res = jnp.matmul(att, vh)                                       # (H,B,F,d)
    res = jnp.concatenate(jnp.split(res, num_heads, axis=0), axis=-1)
    res = jnp.squeeze(res, axis=0)
    res = jax.nn.relu(res)
    row, col = _pair_indices(num_fields)
    p = res[:, jnp.array(row), :]
    qq = inputs_0[:, jnp.array(col), :]
    kpq = p * kernel_param * qq
    # E % num_fields == 0 at these shapes -> adaptive pool == chunked mean
    B, P, _ = kpq.shape
    pooled = kpq.reshape(B, P, num_fields, E // num_fields).mean(axis=-1)
    return pooled, jnp.sum(kpq, axis=-1)


def _run_case(B, key, *, num_fields=8, embedding_size=32, num_heads=4):
    P = num_fields * (num_fields - 1) // 2
    k1, k2, k3, k4, k5, k6, k7 = jax.random.split(key, 7)

    inputs = jax.random.normal(k1, (B, num_fields, embedding_size), jnp.float32)
    inputs_0 = jax.random.normal(k2, (B, num_fields, embedding_size), jnp.float32)
    atten_mask = 0.1 * jax.random.normal(k3, (num_fields, num_fields), jnp.float32)

    # Parameter init matching the module's __init__ semantics (deterministic):
    # Q, K, V ~ N(0, 0.005); kernel ~ kaiming_normal (std = sqrt(2 / fan_in)).
    wq = 0.005 * jax.random.normal(k4, (embedding_size, embedding_size), jnp.float32)
    wk = 0.005 * jax.random.normal(k5, (embedding_size, embedding_size), jnp.float32)
    wv = 0.005 * jax.random.normal(k6, (embedding_size, embedding_size), jnp.float32)
    kernel_param = ((2.0 / embedding_size) ** 0.5) * jax.random.normal(
        k7, (P, embedding_size), jnp.float32)

    pooled, kpq_sum = cross_attention_net(
        inputs, inputs_0, atten_mask, wq, wk, wv, kernel_param,
        num_fields=num_fields, embedding_size=embedding_size,
        num_heads=num_heads)
    jax.block_until_ready((pooled, kpq_sum))

    ref_pooled, ref_sum = reference(
        inputs, inputs_0, atten_mask, wq, wk, wv, kernel_param,
        num_fields=num_fields, num_heads=num_heads)

    assert pooled.shape == (B, P, num_fields)
    assert kpq_sum.shape == (B, P)
    np.testing.assert_allclose(np.asarray(pooled), np.asarray(ref_pooled),
                               rtol=2e-4, atol=2e-5)
    np.testing.assert_allclose(np.asarray(kpq_sum), np.asarray(ref_sum),
                               rtol=2e-4, atol=2e-5)


if __name__ == "__main__":
    root = jax.random.PRNGKey(0)
    k_small, k_big = jax.random.split(root)
    _run_case(2, k_small)    # small batch: single full-extent tile (TB = B = 2)
    _run_case(40, k_big)     # exercises TB=32 batch tiling + padding to 64
    print("KERNEL_OK")
</pallas_src>

<mosaic_0001>
module attributes {stable_mosaic.version = 11 : i64} {
  func.func @_dcap_kernel(%arg0: i32, %arg1: memref<16x32xf32, #tpu.memory_space<vmem>>, %arg2: memref<32x16xf32, #tpu.memory_space<vmem>>, %arg3: memref<32x56xf32, #tpu.memory_space<vmem>>, %arg4: memref<4x32x8xf32, #tpu.memory_space<vmem>>, %arg5: memref<64x32xf32, #tpu.memory_space<vmem>>, %arg6: memref<16x16xf32, #tpu.memory_space<vmem>>, %arg7: memref<16x56xf32, #tpu.memory_space<vmem>>, %arg8: memref<32x56xf32, #tpu.memory_space<vmem>>, %arg9: memref<9x32xf32, #tpu.memory_space<vmem>>, %arg10: memref<9x56xf32, #tpu.memory_space<vmem>>, %arg11: memref<32x16xf32, #tpu.memory_space<vmem>>) attributes {dimension_semantics = [#tpu.dimension_semantics<parallel>], iteration_bounds = array<i64: 1>, scalar_prefetch = 0 : i64, scratch_operands = 1 : i64, tpu.core_type = #tpu.core_type<tc>, window_params = [{transform_indices = @transform_0, window_bounds = array<i64: 16, 32>}, {transform_indices = @transform_1, window_bounds = array<i64: 32, 16>}, {transform_indices = @transform_2, window_bounds = array<i64: 32, 56>}, {pipeline_mode = #tpu.pipeline_mode<synchronous>, transform_indices = @transform_3, window_bounds = array<i64: 4, 32, 8>}, {pipeline_mode = #tpu.pipeline_mode<synchronous>, transform_indices = @transform_4, window_bounds = array<i64: 64, 32>}, {pipeline_mode = #tpu.pipeline_mode<synchronous>, transform_indices = @transform_5, window_bounds = array<i64: 16, 16>}, {pipeline_mode = #tpu.pipeline_mode<synchronous>, transform_indices = @transform_6, window_bounds = array<i64: 16, 56>}, {pipeline_mode = #tpu.pipeline_mode<synchronous>, transform_indices = @transform_7, window_bounds = array<i64: 32, 56>}, {pipeline_mode = #tpu.pipeline_mode<synchronous>, transform_indices = @transform_8, window_bounds = array<i64: 9, 32>}, {transform_indices = @transform_9, window_bounds = array<i64: 9, 56>}]} {
    %c0 = arith.constant 0 : index
    %c0_0 = arith.constant 0 : index
    %0 = vector.load %arg1[%c0, %c0_0] : memref<16x32xf32, #tpu.memory_space<vmem>>, vector<16x32xf32>
    %c0_1 = arith.constant 0 : index
    %c0_2 = arith.constant 0 : index
    %1 = vector.load %arg2[%c0_1, %c0_2] : memref<32x16xf32, #tpu.memory_space<vmem>>, vector<32x16xf32>
    %c0_3 = arith.constant 0 : index
    %c0_4 = arith.constant 0 : index
    %2 = vector.load %arg6[%c0_3, %c0_4] : memref<16x16xf32, #tpu.memory_space<vmem>>, vector<16x16xf32>
    %c0_5 = arith.constant 0 : index
    %c0_6 = arith.constant 0 : index
    %3 = vector.load %arg5[%c0_5, %c0_6] : memref<64x32xf32, #tpu.memory_space<vmem>>, vector<64x32xf32>
    %cst = arith.constant dense<0.000000e+00> : vector<64x16xf32>
    %4 = tpu.matmul %3, %1, %cst {dimension_numbers = #tpu.dot_dimension_numbers<[1], [0], [0], [1], [0, 0, 1, 1], [], []>} : vector<64x32xf32>, vector<32x16xf32>, vector<64x16xf32> -> vector<64x16xf32>
    %5 = vector.extract_strided_slice %4 {offsets = [0, 0], sizes = [8, 16], strides = [1, 1]} : vector<64x16xf32> to vector<8x16xf32>
    %6 = vector.extract_strided_slice %4 {offsets = [32, 0], sizes = [8, 16], strides = [1, 1]} : vector<64x16xf32> to vector<8x16xf32>
    %c0_7 = arith.constant 0 : index
    %c0_8 = arith.constant 0 : index
    %c0_9 = arith.constant 0 : index
    %7 = vector.load %arg4[%c0_7, %c0_8, %c0_9] : memref<4x32x8xf32, #tpu.memory_space<vmem>>, vector<1x32x8xf32>
    %8 = vector.shape_cast %7 : vector<1x32x8xf32> to vector<32x8xf32>
    %cst_10 = arith.constant dense<0.000000e+00> : vector<32x16xf32>
    %9 = tpu.matmul %8, %5, %cst_10 {dimension_numbers = #tpu.dot_dimension_numbers<[1], [0], [0], [1], [0, 0, 1, 1], [], []>} : vector<32x8xf32>, vector<8x16xf32>, vector<32x16xf32> -> vector<32x16xf32>
    %cst_11 = arith.constant dense<0.000000e+00> : vector<16x16xf32>
    %10 = tpu.matmul %0, %9, %cst_11 {dimension_numbers = #tpu.dot_dimension_numbers<[1], [0], [0], [1], [0, 0, 1, 1], [], []>} : vector<16x32xf32>, vector<32x16xf32>, vector<16x16xf32> -> vector<16x16xf32>
    %11 = arith.addf %10, %2 : vector<16x16xf32>
    %cst_12 = arith.constant dense<0xFF800000> : vector<16xf32>
    %12 = vector.multi_reduction <maximumf>, %11, %cst_12 [0] : vector<16x16xf32> to vector<16xf32>
    %13 = vector.shape_cast %12 : vector<16xf32> to vector<1x16xf32>
    %14 = vector.broadcast %13 : vector<1x16xf32> to vector<16x16xf32>
    %15 = arith.subf %11, %14 : vector<16x16xf32>
    %16 = math.exp %15 : vector<16x16xf32>
    %cst_13 = arith.constant dense<0.000000e+00> : vector<16xf32>
    %17 = vector.multi_reduction <add>, %16, %cst_13 [0] : vector<16x16xf32> to vector<16xf32>
    %18 = vector.shape_cast %17 : vector<16xf32> to vector<1x16xf32>
    %cst_14 = arith.constant 1.000000e+00 : f32
    %19 = vector.broadcast %cst_14 : f32 to vector<1x16xf32>
    %20 = arith.divf %19, %18 : vector<1x16xf32>
    %cst_15 = arith.constant dense<0.000000e+00> : vector<8x16xf32>
    %21 = tpu.matmul %6, %16, %cst_15 {dimension_numbers = #tpu.dot_dimension_numbers<[1], [0], [0], [1], [0, 0, 1, 1], [], []>} : vector<8x16xf32>, vector<16x16xf32>, vector<8x16xf32> -> vector<8x16xf32>
    %cst_16 = arith.constant 0.000000e+00 : f32
    %22 = vector.broadcast %cst_16 : f32 to vector<8x16xf32>
    %23 = arith.maximumf %21, %22 : vector<8x16xf32>
    %24 = vector.broadcast %20 : vector<1x16xf32> to vector<8x16xf32>
    %25 = arith.mulf %23, %24 : vector<8x16xf32>
    %c0_17 = arith.constant 0 : index
    %c0_18 = arith.constant 0 : index
    %26 = vector.load %arg11[%c0_17, %c0_18] : memref<32x16xf32, #tpu.memory_space<vmem>>, vector<8x16xf32>
    tpu.vector_store %arg11[%c0_17, %c0_18], %25 {strides = array<i32>} : memref<32x16xf32, #tpu.memory_space<vmem>>, vector<8x16xf32>,
    %27 = vector.extract_strided_slice %4 {offsets = [8, 0], sizes = [8, 16], strides = [1, 1]} : vector<64x16xf32> to vector<8x16xf32>
    %28 = vector.extract_strided_slice %4 {offsets = [40, 0], sizes = [8, 16], strides = [1, 1]} : vector<64x16xf32> to vector<8x16xf32>
    %c1 = arith.constant 1 : index
    %c0_19 = arith.constant 0 : index
    %c0_20 = arith.constant 0 : index
    %29 = vector.load %arg4[%c1, %c0_19, %c0_20] : memref<4x32x8xf32, #tpu.memory_space<vmem>>, vector<1x32x8xf32>
    %30 = vector.shape_cast %29 : vector<1x32x8xf32> to vector<32x8xf32>
    %cst_21 = arith.constant dense<0.000000e+00> : vector<32x16xf32>
    %31 = tpu.matmul %30, %27, %cst_21 {dimension_numbers = #tpu.dot_dimension_numbers<[1], [0], [0], [1], [0, 0, 1, 1], [], []>} : vector<32x8xf32>, vector<8x16xf32>, vector<32x16xf32> -> vector<32x16xf32>
    %cst_22 = arith.constant dense<0.000000e+00> : vector<16x16xf32>
    %32 = tpu.matmul %0, %31, %cst_22 {dimension_numbers = #tpu.dot_dimension_numbers<[1], [0], [0], [1], [0, 0, 1, 1], [], []>} : vector<16x32xf32>, vector<32x16xf32>, vector<16x16xf32> -> vector<16x16xf32>
    %33 = arith.addf %32, %2 : vector<16x16xf32>
    %cst_23 = arith.constant dense<0xFF800000> : vector<16xf32>
    %34 = vector.multi_reduction <maximumf>, %33, %cst_23 [0] : vector<16x16xf32> to vector<16xf32>
    %35 = vector.shape_cast %34 : vector<16xf32> to vector<1x16xf32>
    %36 = vector.broadcast %35 : vector<1x16xf32> to vector<16x16xf32>
    %37 = arith.subf %33, %36 : vector<16x16xf32>
    %38 = math.exp %37 : vector<16x16xf32>
    %cst_24 = arith.constant dense<0.000000e+00> : vector<16xf32>
    %39 = vector.multi_reduction <add>, %38, %cst_24 [0] : vector<16x16xf32> to vector<16xf32>
    %40 = vector.shape_cast %39 : vector<16xf32> to vector<1x16xf32>
    %cst_25 = arith.constant 1.000000e+00 : f32
    %41 = vector.broadcast %cst_25 : f32 to vector<1x16xf32>
    %42 = arith.divf %41, %40 : vector<1x16xf32>
    %cst_26 = arith.constant dense<0.000000e+00> : vector<8x16xf32>
    %43 = tpu.matmul %28, %38, %cst_26 {dimension_numbers = #tpu.dot_dimension_numbers<[1], [0], [0], [1], [0, 0, 1, 1], [], []>} : vector<8x16xf32>, vector<16x16xf32>, vector<8x16xf32> -> vector<8x16xf32>
    %cst_27 = arith.constant 0.000000e+00 : f32
    %44 = vector.broadcast %cst_27 : f32 to vector<8x16xf32>
    %45 = arith.maximumf %43, %44 : vector<8x16xf32>
    %46 = vector.broadcast %42 : vector<1x16xf32> to vector<8x16xf32>
    %47 = arith.mulf %45, %46 : vector<8x16xf32>
    %c8 = arith.constant 8 : index
    %c0_28 = arith.constant 0 : index
    %48 = vector.load %arg11[%c8, %c0_28] : memref<32x16xf32, #tpu.memory_space<vmem>>, vector<8x16xf32>
    tpu.vector_store %arg11[%c8, %c0_28], %47 {strides = array<i32>} : memref<32x16xf32, #tpu.memory_space<vmem>>, vector<8x16xf32>,
    %49 = vector.extract_strided_slice %4 {offsets = [16, 0], sizes = [8, 16], strides = [1, 1]} : vector<64x16xf32> to vector<8x16xf32>
    %50 = vector.extract_strided_slice %4 {offsets = [48, 0], sizes = [8, 16], strides = [1, 1]} : vector<64x16xf32> to vector<8x16xf32>
    %c2 = arith.constant 2 : index
    %c0_29 = arith.constant 0 : index
    %c0_30 = arith.constant 0 : index
    %51 = vector.load %arg4[%c2, %c0_29, %c0_30] : memref<4x32x8xf32, #tpu.memory_space<vmem>>, vector<1x32x8xf32>
    %52 = vector.shape_cast %51 : vector<1x32x8xf32> to vector<32x8xf32>
    %cst_31 = arith.constant dense<0.000000e+00> : vector<32x16xf32>
    %53 = tpu.matmul %52, %49, %cst_31 {dimension_numbers = #tpu.dot_dimension_numbers<[1], [0], [0], [1], [0, 0, 1, 1], [], []>} : vector<32x8xf32>, vector<8x16xf32>, vector<32x16xf32> -> vector<32x16xf32>
    %cst_32 = arith.constant dense<0.000000e+00> : vector<16x16xf32>
    %54 = tpu.matmul %0, %53, %cst_32 {dimension_numbers = #tpu.dot_dimension_numbers<[1], [0], [0], [1], [0, 0, 1, 1], [], []>} : vector<16x32xf32>, vector<32x16xf32>, vector<16x16xf32> -> vector<16x16xf32>
    %55 = arith.addf %54, %2 : vector<16x16xf32>
    %cst_33 = arith.constant dense<0xFF800000> : vector<16xf32>
    %56 = vector.multi_reduction <maximumf>, %55, %cst_33 [0] : vector<16x16xf32> to vector<16xf32>
    %57 = vector.shape_cast %56 : vector<16xf32> to vector<1x16xf32>
    %58 = vector.broadcast %57 : vector<1x16xf32> to vector<16x16xf32>
    %59 = arith.subf %55, %58 : vector<16x16xf32>
    %60 = math.exp %59 : vector<16x16xf32>
    %cst_34 = arith.constant dense<0.000000e+00> : vector<16xf32>
    %61 = vector.multi_reduction <add>, %60, %cst_34 [0] : vector<16x16xf32> to vector<16xf32>
    %62 = vector.shape_cast %61 : vector<16xf32> to vector<1x16xf32>
    %cst_35 = arith.constant 1.000000e+00 : f32
    %63 = vector.broadcast %cst_35 : f32 to vector<1x16xf32>
    %64 = arith.divf %63, %62 : vector<1x16xf32>
    %cst_36 = arith.constant dense<0.000000e+00> : vector<8x16xf32>
    %65 = tpu.matmul %50, %60, %cst_36 {dimension_numbers = #tpu.dot_dimension_numbers<[1], [0], [0], [1], [0, 0, 1, 1], [], []>} : vector<8x16xf32>, vector<16x16xf32>, vector<8x16xf32> -> vector<8x16xf32>
    %cst_37 = arith.constant 0.000000e+00 : f32
    %66 = vector.broadcast %cst_37 : f32 to vector<8x16xf32>
    %67 = arith.maximumf %65, %66 : vector<8x16xf32>
    %68 = vector.broadcast %64 : vector<1x16xf32> to vector<8x16xf32>
    %69 = arith.mulf %67, %68 : vector<8x16xf32>
    %c16 = arith.constant 16 : index
    %c0_38 = arith.constant 0 : index
    %70 = vector.load %arg11[%c16, %c0_38] : memref<32x16xf32, #tpu.memory_space<vmem>>, vector<8x16xf32>
    tpu.vector_store %arg11[%c16, %c0_38], %69 {strides = array<i32>} : memref<32x16xf32, #tpu.memory_space<vmem>>, vector<8x16xf32>,
    %71 = vector.extract_strided_slice %4 {offsets = [24, 0], sizes = [8, 16], strides = [1, 1]} : vector<64x16xf32> to vector<8x16xf32>
    %72 = vector.extract_strided_slice %4 {offsets = [56, 0], sizes = [8, 16], strides = [1, 1]} : vector<64x16xf32> to vector<8x16xf32>
    %c3 = arith.constant 3 : index
    %c0_39 = arith.constant 0 : index
    %c0_40 = arith.constant 0 : index
    %73 = vector.load %arg4[%c3, %c0_39, %c0_40] : memref<4x32x8xf32, #tpu.memory_space<vmem>>, vector<1x32x8xf32>
    %74 = vector.shape_cast %73 : vector<1x32x8xf32> to vector<32x8xf32>
    %cst_41 = arith.constant dense<0.000000e+00> : vector<32x16xf32>
    %75 = tpu.matmul %74, %71, %cst_41 {dimension_numbers = #tpu.dot_dimension_numbers<[1], [0], [0], [1], [0, 0, 1, 1], [], []>} : vector<32x8xf32>, vector<8x16xf32>, vector<32x16xf32> -> vector<32x16xf32>
    %cst_42 = arith.constant dense<0.000000e+00> : vector<16x16xf32>
    %76 = tpu.matmul %0, %75, %cst_42 {dimension_numbers = #tpu.dot_dimension_numbers<[1], [0], [0], [1], [0, 0, 1, 1], [], []>} : vector<16x32xf32>, vector<32x16xf32>, vector<16x16xf32> -> vector<16x16xf32>
    %77 = arith.addf %76, %2 : vector<16x16xf32>
    %cst_43 = arith.constant dense<0xFF800000> : vector<16xf32>
    %78 = vector.multi_reduction <maximumf>, %77, %cst_43 [0] : vector<16x16xf32> to vector<16xf32>
    %79 = vector.shape_cast %78 : vector<16xf32> to vector<1x16xf32>
    %80 = vector.broadcast %79 : vector<1x16xf32> to vector<16x16xf32>
    %81 = arith.subf %77, %80 : vector<16x16xf32>
    %82 = math.exp %81 : vector<16x16xf32>
    %cst_44 = arith.constant dense<0.000000e+00> : vector<16xf32>
    %83 = vector.multi_reduction <add>, %82, %cst_44 [0] : vector<16x16xf32> to vector<16xf32>
    %84 = vector.shape_cast %83 : vector<16xf32> to vector<1x16xf32>
    %cst_45 = arith.constant 1.000000e+00 : f32
    %85 = vector.broadcast %cst_45 : f32 to vector<1x16xf32>
    %86 = arith.divf %85, %84 : vector<1x16xf32>
    %cst_46 = arith.constant dense<0.000000e+00> : vector<8x16xf32>
    %87 = tpu.matmul %72, %82, %cst_46 {dimension_numbers = #tpu.dot_dimension_numbers<[1], [0], [0], [1], [0, 0, 1, 1], [], []>} : vector<8x16xf32>, vector<16x16xf32>, vector<8x16xf32> -> vector<8x16xf32>
    %cst_47 = arith.constant 0.000000e+00 : f32
    %88 = vector.broadcast %cst_47 : f32 to vector<8x16xf32>
    %89 = arith.maximumf %87, %88 : vector<8x16xf32>
    %90 = vector.broadcast %86 : vector<1x16xf32> to vector<8x16xf32>
    %91 = arith.mulf %89, %90 : vector<8x16xf32>
    %c24 = arith.constant 24 : index
    %c0_48 = arith.constant 0 : index
    %92 = vector.load %arg11[%c24, %c0_48] : memref<32x16xf32, #tpu.memory_space<vmem>>, vector<8x16xf32>
    tpu.vector_store %arg11[%c24, %c0_48], %91 {strides = array<i32>} : memref<32x16xf32, #tpu.memory_space<vmem>>, vector<8x16xf32>,
    %c0_49 = arith.constant 0 : index
    %c0_50 = arith.constant 0 : index
    %93 = vector.load %arg11[%c0_49, %c0_50] : memref<32x16xf32, #tpu.memory_space<vmem>>, vector<32x16xf32>
    %c0_51 = arith.constant 0 : index
    %c0_52 = arith.constant 0 : index
    %94 = vector.load %arg7[%c0_51, %c0_52] : memref<16x56xf32, #tpu.memory_space<vmem>>, vector<16x56xf32>
    %cst_53 = arith.constant dense<0.000000e+00> : vector<32x56xf32>
    %95 = tpu.matmul %93, %94, %cst_53 {dimension_numbers = #tpu.dot_dimension_numbers<[1], [0], [0], [1], [0, 0, 1, 1], [], []>} : vector<32x16xf32>, vector<16x56xf32>, vector<32x56xf32> -> vector<32x56xf32>
    %c0_54 = arith.constant 0 : index
    %c0_55 = arith.constant 0 : index
    %96 = vector.load %arg8[%c0_54, %c0_55] : memref<32x56xf32, #tpu.memory_space<vmem>>, vector<32x56xf32>
    %97 = arith.mulf %95, %96 : vector<32x56xf32>
    %c0_56 = arith.constant 0 : index
    %c0_57 = arith.constant 0 : index
    %98 = vector.load %arg3[%c0_56, %c0_57] : memref<32x56xf32, #tpu.memory_space<vmem>>, vector<32x56xf32>
    %99 = arith.mulf %97, %98 : vector<32x56xf32>
    %c0_58 = arith.constant 0 : index
    %c0_59 = arith.constant 0 : index
    %100 = vector.load %arg9[%c0_58, %c0_59] : memref<9x32xf32, #tpu.memory_space<vmem>>, vector<9x32xf32>
    %cst_60 = arith.constant dense<0.000000e+00> : vector<9x56xf32>
    %101 = tpu.matmul %100, %99, %cst_60 {dimension_numbers = #tpu.dot_dimension_numbers<[1], [0], [0], [1], [0, 0, 1, 1], [], []>} : vector<9x32xf32>, vector<32x56xf32>, vector<9x56xf32> -> vector<9x56xf32>
    %c0_61 = arith.constant 0 : index
    %c0_62 = arith.constant 0 : index
    %102 = vector.load %arg10[%c0_61, %c0_62] : memref<9x56xf32, #tpu.memory_space<vmem>>, vector<9x56xf32>
    tpu.vector_store %arg10[%c0_61, %c0_62], %101 {strides = array<i32>} : memref<9x56xf32, #tpu.memory_space<vmem>>, vector<9x56xf32>,
    return
  }
  func.func @transform_0(%arg0: i32) -> (i32, i32) {
    %c0_i32 = arith.constant 0 : i32
    %c0_i32_0 = arith.constant 0 : i32
    return %arg0, %c0_i32 : i32, i32
  }
  func.func @transform_1(%arg0: i32) -> (i32, i32) {
    %c0_i32 = arith.constant 0 : i32
    %c0_i32_0 = arith.constant 0 : i32
    return %c0_i32, %arg0 : i32, i32
  }
  func.func @transform_2(%arg0: i32) -> (i32, i32) {
    %c0_i32 = arith.constant 0 : i32
    %c0_i32_0 = arith.constant 0 : i32
    return %c0_i32, %arg0 : i32, i32
  }
  func.func @transform_3(%arg0: i32) -> (i32, i32, i32) {
    %c0_i32 = arith.constant 0 : i32
    %c0_i32_0 = arith.constant 0 : i32
    %c0_i32_1 = arith.constant 0 : i32
    %c0_i32_2 = arith.constant 0 : i32
    return %c0_i32, %c0_i32_0, %c0_i32_1 : i32, i32, i32
  }
  func.func @transform_4(%arg0: i32) -> (i32, i32) {
    %c0_i32 = arith.constant 0 : i32
    %c0_i32_0 = arith.constant 0 : i32
    %c0_i32_1 = arith.constant 0 : i32
    return %c0_i32, %c0_i32_0 : i32, i32
  }
  func.func @transform_5(%arg0: i32) -> (i32, i32) {
    %c0_i32 = arith.constant 0 : i32
    %c0_i32_0 = arith.constant 0 : i32
    %c0_i32_1 = arith.constant 0 : i32
    return %c0_i32, %c0_i32_0 : i32, i32
  }
  func.func @transform_6(%arg0: i32) -> (i32, i32) {
    %c0_i32 = arith.constant 0 : i32
    %c0_i32_0 = arith.constant 0 : i32
    %c0_i32_1 = arith.constant 0 : i32
    return %c0_i32, %c0_i32_0 : i32, i32
  }
  func.func @transform_7(%arg0: i32) -> (i32, i32) {
    %c0_i32 = arith.constant 0 : i32
    %c0_i32_0 = arith.constant 0 : i32
    %c0_i32_1 = arith.constant 0 : i32
    return %c0_i32, %c0_i32_0 : i32, i32
  }
  func.func @transform_8(%arg0: i32) -> (i32, i32) {
    %c0_i32 = arith.constant 0 : i32
    %c0_i32_0 = arith.constant 0 : i32
    %c0_i32_1 = arith.constant 0 : i32
    return %c0_i32, %c0_i32_0 : i32, i32
  }
  func.func @transform_9(%arg0: i32) -> (i32, i32) {
    %c0_i32 = arith.constant 0 : i32
    %c0_i32_0 = arith.constant 0 : i32
    return %c0_i32, %arg0 : i32, i32
  }
}

</mosaic_0001>

<bundles_post_ra>
// kernel: cross_attention_net.1
= control target key start
LH: loop header
LB: loop body
LE: loop exit
PB: predicated region body
PF: predicated region fallthrough
CT: control target
= control target key end

     0   :  { %vm48_vm0 = vcmask 261120   ;;  %vm118_vm1 = vcmask 64512   ;;  %vm189_vm2 = vcmask 130048   ;;  %s1126_s1 = inlined_call_operand.vmem [shape: f32[32,16], index: 1, kind: input, shape index: {}]   ;;  %s1127_s4 = inlined_call_operand.vmem [shape: f32[64,32], index: 4, kind: input, shape index: {}]   ;;  %s1128_s3 = inlined_call_operand.vmem [shape: f32[4,32,8], index: 3, kind: input, shape index: {}]   ;;  %s1129_s0 = inlined_call_operand.vmem [shape: f32[16,32], index: 0, kind: input, shape index: {}]   ;;  %s1130_s5 = inlined_call_operand.vmem [shape: f32[16,16], index: 5, kind: input, shape index: {}]   ;;  %s1131_s6 = inlined_call_operand.vmem [shape: f32[16,56], index: 6, kind: input, shape index: {}]   ;;  %s1132_s7 = inlined_call_operand.vmem [shape: f32[32,56], index: 7, kind: input, shape index: {}]   ;;  %s1133_s2 = inlined_call_operand.vmem [shape: f32[32,56], index: 2, kind: input, shape index: {}]   ;;  %s1134_s8 = inlined_call_operand.vmem [shape: f32[9,32], index: 8, kind: input, shape index: {}]   ;;  %s1135_s9 = inlined_call_operand.vmem [shape: f32[9,56], index: 9, kind: output, shape index: {}]  }
   0x1   :  { %v37_v0 = vld [vmem:[%s1126_s1 + $0x18] sm:$0xff]  ;;  %v36_v1 = vld [vmem:[%s1126_s1 + $0x10] sm:$0xff]  ;;  %v35_v2 = vld [vmem:[%s1126_s1 + $0x8] sm:$0xff] }
   0x2   :  { %85 = vmatpush.msra.mxu0 %v37_v0  ;;  %v34_v3 = vld [vmem:[%s1126_s1] sm:$0xff]  ;;  %v41_v5 = vld [vmem:[%s1127_s4 + $0x8] sm:$0xff]  ;;  %v42_v8 = vld [vmem:[%s1127_s4 + $0x10] sm:$0xff] }
   0x3   :  { %v40_v4 = vld [vmem:[%s1127_s4] sm:$0xff]  ;;  %v115_v9 = vld [vmem:[%s1128_s3 + $0x8] sm:$0xff]  ;;  %v43_v10 = vld [vmem:[%s1127_s4 + $0x18] sm:$0xff] }
   0x4   :  { %86 = vmatpush.msra.mxu0 %v36_v1  ;;  %v114_v6 = vld [vmem:[%s1128_s3] sm:$0xff]  ;;  %v116_v11 = vld [vmem:[%s1128_s3 + $0x10] sm:$0xff]  ;;  %v117_v13 = vld [vmem:[%s1128_s3 + $0x18] sm:$0xff] }
   0x5   :  { %v44_v12 = vld [vmem:[%s1127_s4 + $0x20] sm:$0xff]  ;;  %v45_v14 = vld [vmem:[%s1127_s4 + $0x28] sm:$0xff]  ;;  %v46_v15 = vld [vmem:[%s1127_s4 + $0x30] sm:$0xff] }
   0x6   :  { %87 = vmatpush.msra.mxu0 %v35_v2  ;;  %v47_v16 = vld [vmem:[%s1127_s4 + $0x38] sm:$0xff]  ;;  %v950_v21 = vld [vmem:[%s1129_s0] sm:$0xff]  ;;  %v957_v22 = vld [vmem:[%s1129_s0 + $0x8] sm:$0xff] }
   0x7   :  { %v974_v31 = vld [vmem:[%s1130_s5] sm:$0xff]  ;;  %v979_v32 = vld [vmem:[%s1130_s5 + $0x8] sm:$0xff]  ;;  %v776_v56 = vld [vmem:[%s1128_s3 + $0x30] sm:$0xff] }
   0x8   :  { %88 = vmatpush.msra.mxu0 %v34_v3  ;;  %v774_v54 = vld [vmem:[%s1128_s3 + $0x20] sm:$0xff]  ;;  %v775_v55 = vld [vmem:[%s1128_s3 + $0x28] sm:$0xff]  ;;  %v777_v57 = vld [vmem:[%s1128_s3 + $0x38] sm:$0xff] }
   0x9   :  { %759 = vmatmul.msk.f32.vlgmr.msra.gmra.mxu0 %vm48_vm0, %v40_v4 }
  0x11   :  { %760 = vmatmul.msk.f32.gmra.mxu0 %vm48_vm0, %v41_v5 }
  0x19   :  { %761 = vmatmul.msk.f32.gmra.mxu0 %vm48_vm0, %v42_v8 }
  0x21   :  { %762 = vmatmul.msk.f32.gmra.mxu0 %vm48_vm0, %v43_v10 }
  0x29   :  { %763 = vmatmul.msk.f32.gmra.mxu0 %vm48_vm0, %v44_v12 }
  0x31   :  { %764 = vmatmul.msk.f32.gmra.mxu0 %vm48_vm0, %v45_v14 }
  0x39   :  { %765 = vmatmul.msk.f32.gmra.mxu0 %vm48_vm0, %v46_v15 }
  0x41   :  { %766 = vmatmul.msk.f32.gmra.mxu0 %vm48_vm0, %v47_v16 }
  0x86   :  { %v90_v7 = vpop.f32.mrf.mxu0 }
  0x87   :  { %146 = vmatpush.msra.mxu1 %v90_v7 }
  0x88   :  { %767 = vmatmul.msk.f32.vlgmr.msra.gmra.mxu1 %vm118_vm1, %v114_v6 }
  0x8e   :  { %v93_v23 = vpop.f32.mrf.mxu0 }
  0x90   :  { %768 = vmatmul.msk.f32.gmra.mxu1 %vm118_vm1, %v115_v9 }
  0x96   :  { %v961_v24 = vpop.f32.mrf.mxu0 }
  0x98   :  { %769 = vmatmul.msk.f32.gmra.mxu1 %vm118_vm1, %v116_v11 }
  0x9e   :  { %v963_v25 = vpop.f32.mrf.mxu0 }
  0xa0   :  { %770 = vmatmul.msk.f32.gmra.mxu1 %vm118_vm1, %v117_v13 }
  0xa6   :  { %v102_v26 = vpop.f32.mrf.mxu0 }
  0xae   :  { %v965_v27 = vpop.f32.mrf.mxu0 }
  0xb6   :  { %v967_v28 = vpop.f32.mrf.mxu0 }
  0xbe   :  { %v969_v29 = vpop.f32.mrf.mxu0 }
 0x105   :  { %v148_v17 = vpop.f32.mrf.mxu1 }
 0x10d   :  { %v151_v18 = vpop.f32.mrf.mxu1 }
 0x115   :  { %v154_v19 = vpop.f32.mrf.mxu1 }
 0x11d   :  { %v157_v20 = vpop.f32.mrf.mxu1 }
 0x11e   :  { %178 = vmatpush.msrb.mxu0 %v157_v20  ;;  %v786_v20 = vld [vmem:[%s1128_s3 + $0x48] sm:$0xff] }
 0x120   :  { %179 = vmatpush.msrb.mxu0 %v154_v19  ;;  %v785_v19 = vld [vmem:[%s1128_s3 + $0x40] sm:$0xff] }
 0x122   :  { %180 = vmatpush.msrb.mxu0 %v151_v18  ;;  %v661_v18 = vld [vmem:[%s1131_s6] sm:$0xff] }
 0x124   :  { %181 = vmatpush.msrb.mxu0 %v148_v17  ;;  %v662_v17 = vld [vmem:[%s1131_s6 + $0x8] sm:$0xff] }
 0x125   :  { %771 = vmatmul.msk.f32.vlgmr.msrb.gmra.mxu0 %vm48_vm0, %v950_v21 }
 0x12d   :  { %772 = vmatmul.msk.f32.gmra.mxu0 %vm48_vm0, %v957_v22 }
 0x1a2   :  { %v183_v30 = vpop.f32.mrf.mxu0 }
 0x1a3   :  { %v184_v33 = vadd.f32 %v183_v30, %v974_v31 }
 0x1a5   :  { %v190_v36 = vsel %vm189_vm2, %v184_v33, -inf }
 0x1aa   :  { %v186_v34 = vpop.f32.mrf.mxu0 }
 0x1ab   :  { %v187_v35 = vadd.f32 %v186_v34, %v979_v32 }
 0x1ad   :  { %v191_v37 = vsel %vm189_vm2, %v187_v35, -inf }
 0x1ae   :  { %v192_v38 = vmax.f32 %v190_v36, %v191_v37 }
 0x1b0   :  { %v193_v39 = vrot.slane %v192_v38, 4 }
 0x1b2   :  { %v194_v40 = vmax.f32 %v192_v38, %v193_v39 }
 0x1b4   :  { %v195_v41 = vrot.slane %v194_v40, 2 }
 0x1b6   :  { %v196_v42 = vmax.f32 %v194_v40, %v195_v41 }
 0x1b8   :  { %v197_v43 = vrot.slane %v196_v42, 1 }
 0x1ba   :  { %v198_v44 = vmax.f32 %v196_v42, %v197_v43 }
 0x1bc   :  { %v199_v45 = vsub.f32 %v184_v33, %v198_v44  ;;  %v200_v46 = vsub.f32 %v187_v35, %v198_v44 }
 0x1be   :  { %v203_v47 = vmul.f32 1.442695, %v200_v46  ;;  %v201_v48 = vmul.f32 1.442695, %v199_v45 }
 0x1c0   :  { %813 = vpow2.f32 %v203_v47 }
 0x1c1   :  { %815 = vpow2.f32 %v201_v48 }
 0x1c6   :  { %v814_v49 = vpop.eup %813 }
 0x1c7   :  { %v816_v50 = vpop.eup %815  ;;  %v206_v51 = vsel %vm189_vm2, %v814_v49, 0.0  ;;  %246 = vmatpush.msra.mxu3 %v814_v49 }
 0x1c8   :  { %v205_v52 = vsel %vm189_vm2, %v816_v50, 0.0 }
 0x1c9   :  { %v207_v53 = vadd.f32 %v206_v51, %v205_v52  ;;  %247 = vmatpush.msra.mxu3 %v816_v50 }
 0x1ca   :  { %773 = vmatmul.msk.f32.vlgmr.msra.gmra.mxu3 %vm189_vm2, %v102_v26 }
 0x1cb   :  { %287 = vmatpush.msrb.mxu3 %v93_v23  ;;  %v208_v58 = vrot.slane %v207_v53, 4  ;;  %v787_v23 = vld [vmem:[%s1128_s3 + $0x50] sm:$0xff] }
 0x1cd   :  { %v209_v59 = vadd.f32 %v208_v58, %v207_v53 }
 0x1cf   :  { %v210_v60 = vrot.slane %v209_v59, 2 }
 0x1d1   :  { %v211_v61 = vadd.f32 %v210_v60, %v209_v59 }
 0x1d2   :  { %778 = vmatmul.msk.f32.vlgmr.msrb.gmra.mxu3 %vm118_vm1, %v774_v54 }
 0x1d3   :  { %v212_v62 = vrot.slane %v211_v61, 1 }
 0x1d5   :  { %v213_v63 = vadd.f32 %v212_v62, %v211_v61 }
 0x1d7   :  { %817 = vrcp.f32 %v213_v63  ;;  %v225_v5 = vand.u32 2147483648, %v213_v63  ;;  %vm219_vm4 = vweird.f32 %v213_v63  ;;  %v223_v6 = vand.u32 2147483647, %v213_v63 }
 0x1d9   :  { %v226_v8 = vor.u32 1.1754944e-38, %v225_v5  ;;  %vm224_vm6 = vcmp.eq.f32.partialorder %v223_v6, 8.507059e+37 }
 0x1da   :  { %779 = vmatmul.msk.f32.gmra.mxu3 %vm118_vm1, %v775_v55 }
 0x1dd   :  { %v818_v0 = vpop.eup %817 }
 0x1de   :  { %v215_v1 = vmul.f32 %v818_v0, %v213_v63  ;;  %vm220_vm3 = vweird.f32 %v818_v0 }
 0x1df   :  { %vm221_vm5 = vmor %vm219_vm4, %vm220_vm3 }
 0x1e0   :  { %v216_v2 = vsub.f32 1.0, %v215_v1 }
 0x1e2   :  { %780 = vmatmul.msk.f32.gmra.mxu3 %vm118_vm1, %v776_v56  ;;  %v217_v3 = vmul.f32 %v818_v0, %v216_v2 }
 0x1e4   :  { %v218_v4 = vadd.f32 %v818_v0, %v217_v3 }
 0x1e6   :  { %v222_v7 = vsel %vm221_vm5, %v818_v0, %v218_v4  ;;  %vm753_vm5 = vcmask 450560  }
 0x1e7   :  { %v227_v11 = vsel %vm224_vm6, %v226_v8, %v222_v7 }
 0x1ea   :  { %781 = vmatmul.msk.f32.gmra.mxu3 %vm118_vm1, %v777_v57 }
 0x24d   :  { %v249_v9 = vpop.f32.mrf.mxu3 }
 0x24e   :  { %v252_v10 = vmax.f32 %v249_v9, 0.0 }
 0x250   :  { %v253_v12 = vmul.f32 %v252_v10, %v227_v11 }
 0x252   :  { %254 = vst.msk [vmem:[#allocation2] sm:$0xff] %vm189_vm2, %v253_v12 }
 0x255   :  { %v289_v13 = vpop.f32.mrf.mxu3 }
 0x259   :  { %v657_v26 = vld [vmem:[#allocation2] sm:$0xff] }
 0x25d   :  { %v292_v14 = vpop.f32.mrf.mxu3 }
 0x265   :  { %v295_v15 = vpop.f32.mrf.mxu3 }
 0x26d   :  { %v298_v16 = vpop.f32.mrf.mxu3 }
 0x26e   :  { %313 = vmatpush.msra.mxu2 %v298_v16 }
 0x270   :  { %314 = vmatpush.msra.mxu2 %v295_v15 }
 0x272   :  { %315 = vmatpush.msra.mxu2 %v292_v14 }
 0x274   :  { %316 = vmatpush.msra.mxu2 %v289_v13 }
 0x275   :  { %782 = vmatmul.msk.f32.vlgmr.msra.gmra.mxu2 %vm48_vm0, %v950_v21 }
 0x276   :  { %421 = vmatpush.msrb.mxu2 %v961_v24  ;;  %v788_v24 = vld [vmem:[%s1128_s3 + $0x58] sm:$0xff] }
 0x278   :  { %689 = vmatpush.msra.mxu2 %v662_v17 }
 0x27a   :  { %690 = vmatpush.msra.mxu2 %v661_v18 }
 0x27d   :  { %783 = vmatmul.msk.f32.gmra.mxu2 %vm48_vm0, %v957_v22 }
 0x285   :  { %789 = vmatmul.msk.f32.vlgmr.msrb.gmra.mxu2 %vm118_vm1, %v785_v19 }
 0x28d   :  { %790 = vmatmul.msk.f32.gmra.mxu2 %vm118_vm1, %v786_v20 }
 0x295   :  { %791 = vmatmul.msk.f32.gmra.mxu2 %vm118_vm1, %v787_v23 }
 0x29d   :  { %792 = vmatmul.msk.f32.gmra.mxu2 %vm118_vm1, %v788_v24 }
 0x2a5   :  { %807 = vmatmul.msk.f32.vlgmr.msra.gmra.mxu2 %vm189_vm2, %v657_v26 }
 0x2f8   :  { %v318_v30 = vpop.f32.mrf.mxu2 }
 0x2f9   :  { %v319_v33 = vadd.f32 %v318_v30, %v974_v31 }
 0x2fb   :  { %v324_v36 = vsel %vm189_vm2, %v319_v33, -inf }
 0x300   :  { %v321_v34 = vpop.f32.mrf.mxu2 }
 0x301   :  { %v322_v35 = vadd.f32 %v321_v34, %v979_v32 }
 0x303   :  { %v325_v37 = vsel %vm189_vm2, %v322_v35, -inf }
 0x304   :  { %v326_v38 = vmax.f32 %v324_v36, %v325_v37 }
 0x306   :  { %v327_v39 = vrot.slane %v326_v38, 4 }
 0x308   :  { %v328_v40 = vmax.f32 %v326_v38, %v327_v39  ;;  %v423_v41 = vpop.f32.mrf.mxu2 }
 0x30a   :  { %v329_v42 = vrot.slane %v328_v40, 2 }
 0x30c   :  { %v330_v43 = vmax.f32 %v328_v40, %v329_v42 }
 0x30e   :  { %v331_v44 = vrot.slane %v330_v43, 1 }
 0x310   :  { %v332_v45 = vmax.f32 %v330_v43, %v331_v44  ;;  %v426_v46 = vpop.f32.mrf.mxu2  ;;  %v796_v43 = vld [vmem:[%s1128_s3 + $0x60] sm:$0xff]  ;;  %v797_v44 = vld [vmem:[%s1128_s3 + $0x68] sm:$0xff] }
 0x312   :  { %v333_v47 = vsub.f32 %v319_v33, %v332_v45  ;;  %v334_v48 = vsub.f32 %v322_v35, %v332_v45  ;;  %v798_v45 = vld [vmem:[%s1128_s3 + $0x70] sm:$0xff] }
 0x314   :  { %v337_v49 = vmul.f32 1.442695, %v334_v48  ;;  %v335_v50 = vmul.f32 1.442695, %v333_v47 }
 0x316   :  { %819 = vpow2.f32 %v337_v49 }
 0x317   :  { %821 = vpow2.f32 %v335_v50 }
 0x318   :  { %v429_v51 = vpop.f32.mrf.mxu2 }
 0x31c   :  { %v820_v52 = vpop.eup %819 }
 0x31d   :  { %v822_v53 = vpop.eup %821  ;;  %v340_v54 = vsel %vm189_vm2, %v820_v52, 0.0  ;;  %380 = vmatpush.msrb.mxu1 %v820_v52 }
 0x31e   :  { %v339_v55 = vsel %vm189_vm2, %v822_v53, 0.0 }
 0x31f   :  { %v341_v56 = vadd.f32 %v340_v54, %v339_v55  ;;  %381 = vmatpush.msrb.mxu1 %v822_v53 }
 0x320   :  { %784 = vmatmul.msk.f32.vlgmr.msrb.gmra.mxu1 %vm189_vm2, %v965_v27  ;;  %v432_v57 = vpop.f32.mrf.mxu2 }
 0x321   :  { %447 = vmatpush.msra.mxu1 %v432_v57  ;;  %v342_v58 = vrot.slane %v341_v56, 4 }
 0x323   :  { %448 = vmatpush.msra.mxu1 %v429_v51  ;;  %v343_v59 = vadd.f32 %v342_v58, %v341_v56 }
 0x325   :  { %449 = vmatpush.msra.mxu1 %v426_v46  ;;  %v344_v60 = vrot.slane %v343_v59, 2 }
 0x327   :  { %450 = vmatpush.msra.mxu1 %v423_v41  ;;  %v345_v61 = vadd.f32 %v344_v60, %v343_v59 }
 0x328   :  { %793 = vmatmul.msk.f32.vlgmr.msra.gmra.mxu1 %vm48_vm0, %v950_v21 }
 0x329   :  { %v346_v62 = vrot.slane %v345_v61, 1 }
 0x32b   :  { %v347_v63 = vadd.f32 %v346_v62, %v345_v61 }
 0x32d   :  { %823 = vrcp.f32 %v347_v63  ;;  %v359_v4 = vand.u32 2147483648, %v347_v63  ;;  %vm353_vm8 = vweird.f32 %v347_v63  ;;  %v357_v5 = vand.u32 2147483647, %v347_v63 }
 0x32f   :  { %v360_v7 = vor.u32 1.1754944e-38, %v359_v4  ;;  %vm358_vm10 = vcmp.eq.f32.partialorder %v357_v5, 8.507059e+37 }
 0x330   :  { %794 = vmatmul.msk.f32.gmra.mxu1 %vm48_vm0, %v957_v22 }
 0x333   :  { %v824_v0 = vpop.eup %823 }
 0x334   :  { %v349_v27 = vmul.f32 %v824_v0, %v347_v63  ;;  %vm354_vm7 = vweird.f32 %v824_v0 }
 0x335   :  { %vm355_vm9 = vmor %vm353_vm8, %vm354_vm7 }
 0x336   :  { %v350_v1 = vsub.f32 1.0, %v349_v27 }
 0x338   :  { %v351_v2 = vmul.f32 %v824_v0, %v350_v1 }
 0x33a   :  { %v352_v3 = vadd.f32 %v824_v0, %v351_v2 }
 0x33c   :  { %v356_v6 = vsel %vm355_vm9, %v824_v0, %v352_v3 }
 0x33d   :  { %v361_v10 = vsel %vm358_vm10, %v360_v7, %v356_v6 }
 0x39d   :  { %v383_v8 = vpop.f32.mrf.mxu1 }
 0x39e   :  { %v386_v9 = vmax.f32 %v383_v8, 0.0 }
 0x3a0   :  { %v387_v11 = vmul.f32 %v386_v9, %v361_v10 }
 0x3a2   :  { %388 = vst.msk [vmem:[#allocation2 + $0x8] sm:$0xff] %vm189_vm2, %v387_v11 }
 0x3a5   :  { %v452_v12 = vpop.f32.mrf.mxu1 }
 0x3a6   :  { %v453_v14 = vadd.f32 %v452_v12, %v974_v31 }
 0x3a8   :  { %v458_v17 = vsel %vm189_vm2, %v453_v14, -inf }
 0x3a9   :  { %v658_v13 = vld [vmem:[#allocation2 + $0x8] sm:$0xff] }
 0x3aa   :  { %808 = vmatmul.msk.f32.gmra.mxu2 %vm189_vm2, %v658_v13 }
 0x3ad   :  { %v455_v15 = vpop.f32.mrf.mxu1 }
 0x3ae   :  { %v456_v16 = vadd.f32 %v455_v15, %v979_v32 }
 0x3b0   :  { %v459_v18 = vsel %vm189_vm2, %v456_v16, -inf }
 0x3b1   :  { %v460_v19 = vmax.f32 %v458_v17, %v459_v18 }
 0x3b3   :  { %v461_v20 = vrot.slane %v460_v19, 4 }
 0x3b5   :  { %v462_v23 = vmax.f32 %v460_v19, %v461_v20 }
 0x3b7   :  { %v463_v24 = vrot.slane %v462_v23, 2 }
 0x3b9   :  { %v464_v26 = vmax.f32 %v462_v23, %v463_v24 }
 0x3bb   :  { %v465_v30 = vrot.slane %v464_v26, 1 }
 0x3bd   :  { %v466_v33 = vmax.f32 %v464_v26, %v465_v30 }
 0x3bf   :  { %v467_v34 = vsub.f32 %v453_v14, %v466_v33  ;;  %v468_v35 = vsub.f32 %v456_v16, %v466_v33 }
 0x3c1   :  { %v469_v36 = vmul.f32 1.442695, %v467_v34  ;;  %v471_v37 = vmul.f32 1.442695, %v468_v35 }
 0x3c3   :  { %825 = vpow2.f32 %v469_v36 }
 0x3c4   :  { %827 = vpow2.f32 %v471_v37 }
 0x3c9   :  { %v826_v38 = vpop.eup %825 }
 0x3ca   :  { %v828_v39 = vpop.eup %827  ;;  %v473_v40 = vsel %vm189_vm2, %v826_v38, 0.0 }
 0x3cb   :  { %v474_v41 = vsel %vm189_vm2, %v828_v39, 0.0  ;;  %514 = vmatpush.msra.mxu3 %v828_v39 }
 0x3cc   :  { %v475_v42 = vadd.f32 %v474_v41, %v473_v40 }
 0x3cd   :  { %515 = vmatpush.msra.mxu3 %v826_v38 }
 0x3ce   :  { %795 = vmatmul.msk.f32.vlgmr.msra.gmra.mxu3 %vm189_vm2, %v967_v28  ;;  %v476_v28 = vrot.slane %v475_v42, 4 }
 0x3cf   :  { %555 = vmatpush.msrb.mxu3 %v963_v25  ;;  %v799_v25 = vld [vmem:[%s1128_s3 + $0x78] sm:$0xff] }
 0x3d0   :  { %v477_v46 = vadd.f32 %v476_v28, %v475_v42 }
 0x3d2   :  { %v478_v47 = vrot.slane %v477_v46, 2 }
 0x3d4   :  { %v479_v48 = vadd.f32 %v478_v47, %v477_v46  ;;  %v692_v47 = vpop.f32.mrf.mxu2 }
 0x3d6   :  { %800 = vmatmul.msk.f32.vlgmr.msrb.gmra.mxu3 %vm118_vm1, %v796_v43  ;;  %v480_v49 = vrot.slane %v479_v48, 1 }
 0x3d8   :  { %v481_v50 = vadd.f32 %v480_v49, %v479_v48 }
 0x3da   :  { %829 = vrcp.f32 %v481_v50  ;;  %v493_v56 = vand.u32 2147483648, %v481_v50  ;;  %vm487_vm12 = vweird.f32 %v481_v50  ;;  %v491_v57 = vand.u32 2147483647, %v481_v50 }
 0x3dc   :  { %v494_v59 = vor.u32 1.1754944e-38, %v493_v56  ;;  %vm492_vm14 = vcmp.eq.f32.partialorder %v491_v57, 8.507059e+37  ;;  %v704_v57 = vld [vmem:[%s1132_s7] sm:$0xff] }
 0x3de   :  { %801 = vmatmul.msk.f32.gmra.mxu3 %vm118_vm1, %v797_v44 }
 0x3e0   :  { %v830_v51 = vpop.eup %829 }
 0x3e1   :  { %v483_v52 = vmul.f32 %v830_v51, %v481_v50  ;;  %vm488_vm11 = vweird.f32 %v830_v51  ;;  %v706_v50 = vld [vmem:[%s1132_s7 + $0x10] sm:$0xff] }
 0x3e2   :  { %vm489_vm13 = vmor %vm487_vm12, %vm488_vm11 }
 0x3e3   :  { %v484_v53 = vsub.f32 1.0, %v483_v52  ;;  %v705_v52 = vld [vmem:[%s1132_s7 + $0x8] sm:$0xff] }
 0x3e5   :  { %v485_v54 = vmul.f32 %v830_v51, %v484_v53 }
 0x3e6   :  { %802 = vmatmul.msk.f32.gmra.mxu3 %vm118_vm1, %v798_v45 }
 0x3e7   :  { %v486_v55 = vadd.f32 %v830_v51, %v485_v54  ;;  %v715_v54 = vld [vmem:[%s1133_s2 + $0x18] sm:$0xff] }
 0x3e9   :  { %v490_v58 = vsel %vm489_vm13, %v830_v51, %v486_v55  ;;  %v707_v51 = vld [vmem:[%s1132_s7 + $0x18] sm:$0xff] }
 0x3ea   :  { %v495_v62 = vsel %vm492_vm14, %v494_v59, %v490_v58  ;;  %v714_v58 = vld [vmem:[%s1133_s2 + $0x10] sm:$0xff] }
 0x3ee   :  { %803 = vmatmul.msk.f32.gmra.mxu3 %vm118_vm1, %v799_v25 }
 0x42d   :  { %v695_v48 = vpop.f32.mrf.mxu2 }
 0x42e   :  { %v709_v59 = vmul.f32 %v705_v52, %v695_v48 }
 0x451   :  { %v517_v60 = vpop.f32.mrf.mxu3 }
 0x452   :  { %v520_v61 = vmax.f32 %v517_v60, 0.0 }
 0x454   :  { %v521_v63 = vmul.f32 %v520_v61, %v495_v62  ;;  %v713_v61 = vld [vmem:[%s1133_s2 + $0x8] sm:$0xff]  ;;  %v708_v62 = vmul.f32 %v704_v57, %v692_v47 }
 0x456   :  { %522 = vst.msk [vmem:[#allocation2 + $0x10] sm:$0xff] %vm189_vm2, %v521_v63 }
 0x459   :  { %v557_v0 = vpop.f32.mrf.mxu3 }
 0x45d   :  { %v659_v27 = vld [vmem:[#allocation2 + $0x10] sm:$0xff] }
 0x45e   :  { %809 = vmatmul.msk.f32.gmra.mxu2 %vm189_vm2, %v659_v27  ;;  %v717_v27 = vmul.f32 %v713_v61, %v709_v59 }
 0x461   :  { %v560_v1 = vpop.f32.mrf.mxu3 }
 0x469   :  { %v563_v2 = vpop.f32.mrf.mxu3 }
 0x471   :  { %v566_v3 = vpop.f32.mrf.mxu3 }
 0x472   :  { %581 = vmatpush.msrb.mxu1 %v566_v3  ;;  %v721_v3 = vld [vmem:[%s1134_s8 + $0x8] sm:$0x1] }
 0x474   :  { %582 = vmatpush.msrb.mxu1 %v563_v2  ;;  %v720_v2 = vld [vmem:[%s1134_s8] sm:$0xff] }
 0x476   :  { %583 = vmatpush.msrb.mxu1 %v560_v1 }
 0x478   :  { %584 = vmatpush.msrb.mxu1 %v557_v0  ;;  %v712_v0 = vld [vmem:[%s1133_s2] sm:$0xff] }
 0x479   :  { %804 = vmatmul.msk.f32.vlgmr.msrb.gmra.mxu1 %vm48_vm0, %v950_v21  ;;  %v716_v1 = vmul.f32 %v712_v0, %v708_v62 }
 0x481   :  { %805 = vmatmul.msk.f32.gmra.mxu1 %vm48_vm0, %v957_v22 }
 0x4e1   :  { %v698_v49 = vpop.f32.mrf.mxu2 }
 0x4e2   :  { %v710_v55 = vmul.f32 %v706_v50, %v698_v49 }
 0x4e4   :  { %v718_v63 = vmul.f32 %v714_v58, %v710_v55 }
 0x4f6   :  { %v586_v4 = vpop.f32.mrf.mxu1 }
 0x4f7   :  { %v587_v5 = vadd.f32 %v586_v4, %v974_v31 }
 0x4f9   :  { %v592_v8 = vsel %vm189_vm2, %v587_v5, -inf }
 0x4fe   :  { %v589_v6 = vpop.f32.mrf.mxu1 }
 0x4ff   :  { %v590_v7 = vadd.f32 %v589_v6, %v979_v32 }
 0x501   :  { %v593_v9 = vsel %vm189_vm2, %v590_v7, -inf }
 0x502   :  { %v594_v10 = vmax.f32 %v592_v8, %v593_v9 }
 0x504   :  { %v595_v11 = vrot.slane %v594_v10, 4 }
 0x506   :  { %v596_v12 = vmax.f32 %v594_v10, %v595_v11 }
 0x508   :  { %v597_v13 = vrot.slane %v596_v12, 2 }
 0x50a   :  { %v598_v14 = vmax.f32 %v596_v12, %v597_v13 }
 0x50c   :  { %v599_v15 = vrot.slane %v598_v14, 1 }
 0x50e   :  { %v600_v21 = vmax.f32 %v598_v14, %v599_v15 }
 0x510   :  { %v601_v16 = vsub.f32 %v587_v5, %v600_v21  ;;  %v602_v17 = vsub.f32 %v590_v7, %v600_v21 }
 0x512   :  { %v603_v22 = vmul.f32 1.442695, %v601_v16  ;;  %v605_v18 = vmul.f32 1.442695, %v602_v17 }
 0x514   :  { %831 = vpow2.f32 %v603_v22 }
 0x515   :  { %833 = vpow2.f32 %v605_v18 }
 0x51a   :  { %v832_v31 = vpop.eup %831 }
 0x51b   :  { %v834_v19 = vpop.eup %833  ;;  %v607_v32 = vsel %vm189_vm2, %v832_v31, 0.0 }
 0x51c   :  { %v608_v20 = vsel %vm189_vm2, %v834_v19, 0.0  ;;  %648 = vmatpush.msra.mxu3 %v834_v19 }
 0x51d   :  { %v609_v23 = vadd.f32 %v608_v20, %v607_v32 }
 0x51e   :  { %649 = vmatpush.msra.mxu3 %v832_v31 }
 0x51f   :  { %806 = vmatmul.msk.f32.vlgmr.msra.gmra.mxu3 %vm189_vm2, %v969_v29  ;;  %v610_v24 = vrot.slane %v609_v23, 4 }
 0x521   :  { %v611_v26 = vadd.f32 %v610_v24, %v609_v23 }
 0x523   :  { %v612_v30 = vrot.slane %v611_v26, 2 }
 0x525   :  { %v613_v33 = vadd.f32 %v612_v30, %v611_v26 }
 0x527   :  { %v614_v34 = vrot.slane %v613_v33, 1 }
 0x529   :  { %v615_v35 = vadd.f32 %v614_v34, %v613_v33 }
 0x52b   :  { %835 = vrcp.f32 %v615_v35  ;;  %v627_v41 = vand.u32 2147483648, %v615_v35  ;;  %vm621_vm1 = vweird.f32 %v615_v35  ;;  %v625_v42 = vand.u32 2147483647, %v615_v35 }
 0x52d   :  { %v628_v44 = vor.u32 1.1754944e-38, %v627_v41  ;;  %vm626_vm4 = vcmp.eq.f32.partialorder %v625_v42, 8.507059e+37 }
 0x531   :  { %v836_v36 = vpop.eup %835 }
 0x532   :  { %v617_v37 = vmul.f32 %v836_v36, %v615_v35  ;;  %vm622_vm15 = vweird.f32 %v836_v36 }
 0x533   :  { %vm623_vm3 = vmor %vm621_vm1, %vm622_vm15 }
 0x534   :  { %v618_v38 = vsub.f32 1.0, %v617_v37 }
 0x536   :  { %v619_v39 = vmul.f32 %v836_v36, %v618_v38 }
 0x538   :  { %v620_v40 = vadd.f32 %v836_v36, %v619_v39 }
 0x53a   :  { %v624_v43 = vsel %vm623_vm3, %v836_v36, %v620_v40 }
 0x53b   :  { %v629_v25 = vsel %vm626_vm4, %v628_v44, %v624_v43 }
 0x5a2   :  { %v651_v29 = vpop.f32.mrf.mxu3 }
 0x5a3   :  { %v654_v45 = vmax.f32 %v651_v29, 0.0 }
 0x5a5   :  { %v655_v28 = vmul.f32 %v654_v45, %v629_v25 }
 0x5a7   :  { %656 = vst.msk [vmem:[#allocation2 + $0x18] sm:$0xff] %vm189_vm2, %v655_v28 }
 0x5ae   :  { %v660_v46 = vld [vmem:[#allocation2 + $0x18] sm:$0xff] }
 0x5af   :  { %810 = vmatmul.msk.f32.gmra.mxu2 %vm189_vm2, %v660_v46  ;;  %vm751_vm2 = vcmask 457728  }
 0x632   :  { %v701_v53 = vpop.f32.mrf.mxu2 }
 0x633   :  { %v711_v56 = vmul.f32 %v707_v51, %v701_v53 }
 0x635   :  { %v719_v60 = vmul.f32 %v715_v54, %v711_v56 }
 0x637   :  { %740 = vmatpush.msra.mxu1 %v719_v60 }
 0x639   :  { %741 = vmatpush.msra.mxu1 %v718_v63 }
 0x63b   :  { %742 = vmatpush.msra.mxu1 %v717_v27 }
 0x63d   :  { %743 = vmatpush.msra.mxu1 %v716_v1 }
 0x63e   :  { %811 = vmatmul.msk.f32.vlgmr.msra.gmra.mxu1 %vm48_vm0, %v720_v2 }
 0x646   :  { %812 = vmatmul.msk.f32.gmra.mxu1 %vm48_vm0, %v721_v3 }
 0x6bb   :  { %v745_v4 = vpop.f32.mrf.mxu1 }
 0x6bc   :  { %752 = vst.msk [vmem:[%s1135_s9] sm:$0xff] %vm751_vm2, %v745_v4 }
 0x6c3   :  { %v748_v5 = vpop.f32.mrf.mxu1 }
 0x6c4   :  { %754 = vst.msk [vmem:[%s1135_s9 + $0x8] sm:$0x1] %vm753_vm5, %v748_v5 }

</bundles_post_ra>
